<compile_context>
chip_gen: v6e
topology: v6e:2x2x1
jax: 0.10.0
libtpu: 0.0.40
codegen_flags: <defaults>
</compile_context>

<pallas_src>
import functools
import math

import jax
import jax.numpy as jnp
from jax.experimental import pallas as pl
from jax.experimental.pallas import tpu as pltpu


def _pick_q_tile(sq):
    """Query-tile length: full Sq when small, else the largest multiple-of-8
    divisor of Sq that is <= 512 (keeps blocks (8,128)-legal)."""
    if sq <= 512:
        return sq
    for t in range(512, 7, -8):
        if sq % t == 0:
            return t
    return sq


# ---------------------------------------------------------------------------
# Kernel: one (batch element, query tile) per grid step, all heads fused.
# ---------------------------------------------------------------------------
def mha_kernel(vl_ref,                      # scalar prefetch: (B,) int32 in SMEM
               q_ref, k_ref, v_ref,         # (1,tq,Dq) / (1,Skv,Dk) / (1,Skv,Dv)
               wq_ref, wk_ref, wv_ref,      # head-major weights: (nh,D,d)
               wo_ref,                      # (H, H)
               o_ref,                       # (1, tq, H)
               qh_s, kh_s, vh_s, cat_s,     # VMEM scratch
               *, num_heads, head_dim, scale):
    b = pl.program_id(0)
    qi = pl.program_id(1)
    valid_len = vl_ref[b]                   # scalar int32

    # K/V head projections: computed once per batch element and cached in
    # scratch across all Sq tiles (qi axis is "arbitrary", so this carry is
    # legal; K/V blocks themselves are VMEM-resident across qi).
    @pl.when(qi == 0)
    def _():
        k = k_ref[0]                        # (Skv, Dk)
        v = v_ref[0]                        # (Skv, Dv)
        for h in range(num_heads):          # leading-dim ref indexing only
            kh_s[h] = jnp.dot(k, wk_ref[h], preferred_element_type=jnp.float32)
            vh_s[h] = jnp.dot(v, wv_ref[h], preferred_element_type=jnp.float32)

    # Q head projections; fold the 1/sqrt(d) scale in here once (tq*H mults).
    q = q_ref[0]                            # (tq, Dq)
    for h in range(num_heads):
        qh_s[h] = jnp.dot(q, wq_ref[h],
                          preferred_element_type=jnp.float32) * scale

    qh = qh_s[...]                          # (nh, tq,  d)
    kh = kh_s[...]                          # (nh, Skv, d)
    vh = vh_s[...]                          # (nh, Skv, d)

    # Scores for all heads at once; contraction via dot_general dims — no
    # materialized K transpose (MXU consumes K untransposed).
    scores = jnp.einsum('hqd,hkd->hqk', qh, kh,
                        preferred_element_type=jnp.float32)    # (nh, tq, Skv)

    # masked_softmax semantics: invalid key positions -> -1e6 before softmax
    # (fully-masked rows degrade to uniform attention, same as the reference).
    key_ids = jax.lax.broadcasted_iota(jnp.int32, scores.shape, 2)
    scores = jnp.where(key_ids < valid_len, scores, -1000000.0)

    m = jnp.max(scores, axis=-1, keepdims=True)
    p = jnp.exp(scores - m)
    denom = jnp.sum(p, axis=-1, keepdims=True)
    attn = p * pl.reciprocal(denom)         # multiply-by-reciprocal (exact)
    # (attention dropout: identity in eval mode)

    ctx = jnp.einsum('hqk,hkd->hqd', attn, vh,
                     preferred_element_type=jnp.float32)       # (nh, tq, d)

    # Concat heads into (tq, H) scratch, then ONE full-depth W_o matmul.
    for h in range(num_heads):
        cat_s[:, h * head_dim:(h + 1) * head_dim] = ctx[h]

    out = jnp.dot(cat_s[...], wo_ref[...],
                  preferred_element_type=jnp.float32)          # (tq, H)
    o_ref[0] = out.astype(o_ref.dtype)


# ---------------------------------------------------------------------------
# Wrapper
# ---------------------------------------------------------------------------
def multi_head_attention_forward(queries, keys, values, valid_lens,
                                 wq, wk, wv, wo, *, num_heads):
    B, Sq, Dq = queries.shape
    _, Skv, Dk = keys.shape
    Dv = values.shape[2]
    H = wq.shape[1]
    assert H % num_heads == 0
    hd = H // num_heads

    if valid_lens is None:
        vl = jnp.full((B,), Skv, dtype=jnp.int32)      # no masking
    else:
        assert valid_lens.ndim == 1, "2-D valid_lens unsupported (see TODO)"
        vl = valid_lens.astype(jnp.int32)

    # Head-major weight views (host-side, free): w*3[h] == w*[:, h*hd:(h+1)*hd]
    wq3 = wq.reshape(Dq, num_heads, hd).transpose(1, 0, 2)
    wk3 = wk.reshape(Dk, num_heads, hd).transpose(1, 0, 2)
    wv3 = wv.reshape(Dv, num_heads, hd).transpose(1, 0, 2)

    tq = _pick_q_tile(Sq)
    nq = Sq // tq

    # Explicit VMEM budget with headroom (weights counted double-buffered).
    isz = jnp.dtype(queries.dtype).itemsize
    act = 2 * isz * (tq * Dq + Skv * Dk + Skv * Dv + tq * H)       # dbl-buffered
    wgt = 2 * jnp.dtype(wq.dtype).itemsize * (num_heads * hd * (Dq + Dk + Dv) + H * H)
    scr = 4 * (num_heads * tq * hd + 2 * num_heads * Skv * hd + tq * H)
    tmp = 4 * (3 * num_heads * tq * Skv + num_heads * tq * hd)      # scores/p/attn/ctx
    vmem_limit = int(min(max(2 * (act + wgt + scr + tmp), 32 * 2**20), 64 * 2**20))

    kernel = functools.partial(
        mha_kernel, num_heads=num_heads, head_dim=hd, scale=1.0 / math.sqrt(hd))

    return pl.pallas_call(
        kernel,
        out_shape=jax.ShapeDtypeStruct((B, Sq, H), queries.dtype),
        grid_spec=pltpu.PrefetchScalarGridSpec(
            num_scalar_prefetch=1,
            grid=(B, nq),
            in_specs=[
                pl.BlockSpec((1, tq, Dq), lambda b, qi, vl: (b, qi, 0)),
                # K/V + weights: constant across qi -> VMEM-resident.
                pl.BlockSpec((1, Skv, Dk), lambda b, qi, vl: (b, 0, 0)),
                pl.BlockSpec((1, Skv, Dv), lambda b, qi, vl: (b, 0, 0)),
                pl.BlockSpec((num_heads, Dq, hd), lambda b, qi, vl: (0, 0, 0)),
                pl.BlockSpec((num_heads, Dk, hd), lambda b, qi, vl: (0, 0, 0)),
                pl.BlockSpec((num_heads, Dv, hd), lambda b, qi, vl: (0, 0, 0)),
                pl.BlockSpec((H, H), lambda b, qi, vl: (0, 0)),
            ],
            out_specs=pl.BlockSpec((1, tq, H), lambda b, qi, vl: (b, qi, 0)),
            scratch_shapes=[
                pltpu.VMEM((num_heads, tq, hd), jnp.float32),    # Q heads
                pltpu.VMEM((num_heads, Skv, hd), jnp.float32),   # K heads (cached)
                pltpu.VMEM((num_heads, Skv, hd), jnp.float32),   # V heads (cached)
                pltpu.VMEM((tq, H), jnp.float32),                # head concat
            ],
        ),
        compiler_params=pltpu.CompilerParams(
            # Batch axis parallel (megacore); Sq axis arbitrary because the
            # cached K/V head projections are carried in scratch across it.
            dimension_semantics=("parallel", "arbitrary"),
            vmem_limit_bytes=vmem_limit,
        ),
    )(vl, queries, keys, values, wq3, wk3, wv3, wo)


# ---------------------------------------------------------------------------
# Pure-JAX reference (mirrors the PyTorch module exactly, eval mode)
# ---------------------------------------------------------------------------
def reference_mha(queries, keys, values, valid_lens, wq, wk, wv, wo, *, num_heads):
    B, Sq, _ = queries.shape
    Skv = keys.shape[1]
    H = wq.shape[1]
    d = H // num_heads

    def split(x):                                      # transpose_qkv
        b, s, _ = x.shape
        return x.reshape(b, s, num_heads, d).transpose(0, 2, 1, 3)   # (B,h,S,d)

    q = split(queries @ wq)
    k = split(keys @ wk)
    v = split(values @ wv)
    scores = jnp.einsum("bhqd,bhkd->bhqk", q, k) / math.sqrt(d)
    if valid_lens is not None:
        mask = jnp.arange(Skv)[None, None, None, :] < valid_lens[:, None, None, None]
        scores = jnp.where(mask, scores, -1000000.0)
    attn = jax.nn.softmax(scores, axis=-1)
    out = jnp.einsum("bhqk,bhkd->bhqd", attn, v)       # (B,h,Sq,d)
    out = out.transpose(0, 2, 1, 3).reshape(B, Sq, H)  # transpose_output
    return out @ wo


# ---------------------------------------------------------------------------
# Demo / self-test
# ---------------------------------------------------------------------------
if __name__ == "__main__":
    batch, seq, num_hiddens, num_heads = 2, 8, 32, 4
    key_size = query_size = value_size = num_hiddens

    root = jax.random.PRNGKey(0)
    kq, kk, kv, kwq, kwk, kwv, kwo = jax.random.split(root, 7)

    queries = jax.random.normal(kq, (batch, seq, query_size), dtype=jnp.float32)
    keys = jax.random.normal(kk, (batch, seq, key_size), dtype=jnp.float32)
    values = jax.random.normal(kv, (batch, seq, value_size), dtype=jnp.float32)
    valid_lens = jnp.array([3, 6], dtype=jnp.int32)

    w_scale = 1.0 / math.sqrt(num_hiddens)
    W_q = jax.random.normal(kwq, (query_size, num_hiddens), dtype=jnp.float32) * w_scale
    W_k = jax.random.normal(kwk, (key_size, num_hiddens), dtype=jnp.float32) * w_scale
    W_v = jax.random.normal(kwv, (value_size, num_hiddens), dtype=jnp.float32) * w_scale
    W_o = jax.random.normal(kwo, (num_hiddens, num_hiddens), dtype=jnp.float32) * w_scale

    # Masked path.
    y = multi_head_attention_forward(queries, keys, values, valid_lens,
                                     W_q, W_k, W_v, W_o, num_heads=num_heads)
    y = jax.block_until_ready(y)
    y_ref = reference_mha(queries, keys, values, valid_lens,
                          W_q, W_k, W_v, W_o, num_heads=num_heads)
    assert y.shape == (batch, seq, num_hiddens)
    assert jnp.allclose(y, y_ref, atol=1e-4, rtol=1e-4), "masked MHA mismatch"

    # Unmasked path (valid_lens=None).
    y2 = multi_head_attention_forward(queries, keys, values, None,
                                      W_q, W_k, W_v, W_o, num_heads=num_heads)
    y2 = jax.block_until_ready(y2)
    y2_ref = reference_mha(queries, keys, values, None,
                           W_q, W_k, W_v, W_o, num_heads=num_heads)
    assert jnp.allclose(y2, y2_ref, atol=1e-4, rtol=1e-4), "unmasked MHA mismatch"

    print("KERNEL_OK")
</pallas_src>

<mosaic_0001>
module attributes {stable_mosaic.version = 11 : i64} {
  func.func @mha_kernel(%arg0: i32, %arg1: i32, %arg2: memref<2xi32, #tpu.memory_space<smem>>, %arg3: memref<1x8x32xf32, #tpu.memory_space<vmem>>, %arg4: memref<1x8x32xf32, #tpu.memory_space<vmem>>, %arg5: memref<1x8x32xf32, #tpu.memory_space<vmem>>, %arg6: memref<4x32x8xf32, #tpu.memory_space<vmem>>, %arg7: memref<4x32x8xf32, #tpu.memory_space<vmem>>, %arg8: memref<4x32x8xf32, #tpu.memory_space<vmem>>, %arg9: memref<32x32xf32, #tpu.memory_space<vmem>>, %arg10: memref<1x8x32xf32, #tpu.memory_space<vmem>>, %arg11: memref<4x8x8xf32, #tpu.memory_space<vmem>>, %arg12: memref<4x8x8xf32, #tpu.memory_space<vmem>>, %arg13: memref<4x8x8xf32, #tpu.memory_space<vmem>>, %arg14: memref<8x32xf32, #tpu.memory_space<vmem>>) attributes {dimension_semantics = [#tpu.dimension_semantics<parallel>, #tpu.dimension_semantics<arbitrary>], iteration_bounds = array<i64: 2, 1>, scalar_prefetch = 1 : i64, scratch_operands = 4 : i64, tpu.core_type = #tpu.core_type<tc>, window_params = [{transform_indices = @transform_0, window_bounds = array<i64: 1, 8, 32>}, {transform_indices = @transform_1, window_bounds = array<i64: 1, 8, 32>}, {transform_indices = @transform_2, window_bounds = array<i64: 1, 8, 32>}, {pipeline_mode = #tpu.pipeline_mode<synchronous>, transform_indices = @transform_3, window_bounds = array<i64: 4, 32, 8>}, {pipeline_mode = #tpu.pipeline_mode<synchronous>, transform_indices = @transform_4, window_bounds = array<i64: 4, 32, 8>}, {pipeline_mode = #tpu.pipeline_mode<synchronous>, transform_indices = @transform_5, window_bounds = array<i64: 4, 32, 8>}, {pipeline_mode = #tpu.pipeline_mode<synchronous>, transform_indices = @transform_6, window_bounds = array<i64: 32, 32>}, {transform_indices = @transform_7, window_bounds = array<i64: 1, 8, 32>}]} {
    %0 = arith.index_cast %arg0 : i32 to index
    %1 = memref.load %arg2[%0] : memref<2xi32, #tpu.memory_space<smem>>
    %c0_i32 = arith.constant 0 : i32
    %2 = arith.cmpi eq, %arg1, %c0_i32 : i32
    %3 = arith.extui %2 : i1 to i32
    %c0_i32_0 = arith.constant 0 : i32
    %4 = arith.cmpi ne, %3, %c0_i32_0 : i32
    scf.if %4 {
      %c0_58 = arith.constant 0 : index
      %c0_59 = arith.constant 0 : index
      %c0_60 = arith.constant 0 : index
      %77 = vector.load %arg4[%c0_58, %c0_59, %c0_60] : memref<1x8x32xf32, #tpu.memory_space<vmem>>, vector<1x8x32xf32>
      %78 = vector.shape_cast %77 : vector<1x8x32xf32> to vector<8x32xf32>
      %c0_61 = arith.constant 0 : index
      %c0_62 = arith.constant 0 : index
      %c0_63 = arith.constant 0 : index
      %79 = vector.load %arg5[%c0_61, %c0_62, %c0_63] : memref<1x8x32xf32, #tpu.memory_space<vmem>>, vector<1x8x32xf32>
      %80 = vector.shape_cast %79 : vector<1x8x32xf32> to vector<8x32xf32>
      %c0_64 = arith.constant 0 : index
      %c0_65 = arith.constant 0 : index
      %c0_66 = arith.constant 0 : index
      %81 = vector.load %arg7[%c0_64, %c0_65, %c0_66] : memref<4x32x8xf32, #tpu.memory_space<vmem>>, vector<1x32x8xf32>
      %82 = vector.shape_cast %81 : vector<1x32x8xf32> to vector<32x8xf32>
      %cst_67 = arith.constant dense<0.000000e+00> : vector<8x8xf32>
      %83 = tpu.matmul %78, %82, %cst_67 {dimension_numbers = #tpu.dot_dimension_numbers<[1], [0], [0], [1], [0, 0, 1, 1], [], []>} : vector<8x32xf32>, vector<32x8xf32>, vector<8x8xf32> -> vector<8x8xf32>
      %c0_68 = arith.constant 0 : index
      %c0_69 = arith.constant 0 : index
      %c0_70 = arith.constant 0 : index
      %84 = vector.load %arg12[%c0_68, %c0_69, %c0_70] : memref<4x8x8xf32, #tpu.memory_space<vmem>>, vector<1x8x8xf32>
      %85 = vector.shape_cast %84 : vector<1x8x8xf32> to vector<8x8xf32>
      %86 = vector.shape_cast %83 : vector<8x8xf32> to vector<1x8x8xf32>
      tpu.vector_store %arg12[%c0_68, %c0_69, %c0_70], %86 {strides = array<i32>} : memref<4x8x8xf32, #tpu.memory_space<vmem>>, vector<1x8x8xf32>,
      %c0_71 = arith.constant 0 : index
      %c0_72 = arith.constant 0 : index
      %c0_73 = arith.constant 0 : index
      %87 = vector.load %arg8[%c0_71, %c0_72, %c0_73] : memref<4x32x8xf32, #tpu.memory_space<vmem>>, vector<1x32x8xf32>
      %88 = vector.shape_cast %87 : vector<1x32x8xf32> to vector<32x8xf32>
      %cst_74 = arith.constant dense<0.000000e+00> : vector<8x8xf32>
      %89 = tpu.matmul %80, %88, %cst_74 {dimension_numbers = #tpu.dot_dimension_numbers<[1], [0], [0], [1], [0, 0, 1, 1], [], []>} : vector<8x32xf32>, vector<32x8xf32>, vector<8x8xf32> -> vector<8x8xf32>
      %c0_75 = arith.constant 0 : index
      %c0_76 = arith.constant 0 : index
      %c0_77 = arith.constant 0 : index
      %90 = vector.load %arg13[%c0_75, %c0_76, %c0_77] : memref<4x8x8xf32, #tpu.memory_space<vmem>>, vector<1x8x8xf32>
      %91 = vector.shape_cast %90 : vector<1x8x8xf32> to vector<8x8xf32>
      %92 = vector.shape_cast %89 : vector<8x8xf32> to vector<1x8x8xf32>
      tpu.vector_store %arg13[%c0_75, %c0_76, %c0_77], %92 {strides = array<i32>} : memref<4x8x8xf32, #tpu.memory_space<vmem>>, vector<1x8x8xf32>,
      %c1_78 = arith.constant 1 : index
      %c0_79 = arith.constant 0 : index
      %c0_80 = arith.constant 0 : index
      %93 = vector.load %arg7[%c1_78, %c0_79, %c0_80] : memref<4x32x8xf32, #tpu.memory_space<vmem>>, vector<1x32x8xf32>
      %94 = vector.shape_cast %93 : vector<1x32x8xf32> to vector<32x8xf32>
      %cst_81 = arith.constant dense<0.000000e+00> : vector<8x8xf32>
      %95 = tpu.matmul %78, %94, %cst_81 {dimension_numbers = #tpu.dot_dimension_numbers<[1], [0], [0], [1], [0, 0, 1, 1], [], []>} : vector<8x32xf32>, vector<32x8xf32>, vector<8x8xf32> -> vector<8x8xf32>
      %c1_82 = arith.constant 1 : index
      %c0_83 = arith.constant 0 : index
      %c0_84 = arith.constant 0 : index
      %96 = vector.load %arg12[%c1_82, %c0_83, %c0_84] : memref<4x8x8xf32, #tpu.memory_space<vmem>>, vector<1x8x8xf32>
      %97 = vector.shape_cast %96 : vector<1x8x8xf32> to vector<8x8xf32>
      %98 = vector.shape_cast %95 : vector<8x8xf32> to vector<1x8x8xf32>
      tpu.vector_store %arg12[%c1_82, %c0_83, %c0_84], %98 {strides = array<i32>} : memref<4x8x8xf32, #tpu.memory_space<vmem>>, vector<1x8x8xf32>,
      %c1_85 = arith.constant 1 : index
      %c0_86 = arith.constant 0 : index
      %c0_87 = arith.constant 0 : index
      %99 = vector.load %arg8[%c1_85, %c0_86, %c0_87] : memref<4x32x8xf32, #tpu.memory_space<vmem>>, vector<1x32x8xf32>
      %100 = vector.shape_cast %99 : vector<1x32x8xf32> to vector<32x8xf32>
      %cst_88 = arith.constant dense<0.000000e+00> : vector<8x8xf32>
      %101 = tpu.matmul %80, %100, %cst_88 {dimension_numbers = #tpu.dot_dimension_numbers<[1], [0], [0], [1], [0, 0, 1, 1], [], []>} : vector<8x32xf32>, vector<32x8xf32>, vector<8x8xf32> -> vector<8x8xf32>
      %c1_89 = arith.constant 1 : index
      %c0_90 = arith.constant 0 : index
      %c0_91 = arith.constant 0 : index
      %102 = vector.load %arg13[%c1_89, %c0_90, %c0_91] : memref<4x8x8xf32, #tpu.memory_space<vmem>>, vector<1x8x8xf32>
      %103 = vector.shape_cast %102 : vector<1x8x8xf32> to vector<8x8xf32>
      %104 = vector.shape_cast %101 : vector<8x8xf32> to vector<1x8x8xf32>
      tpu.vector_store %arg13[%c1_89, %c0_90, %c0_91], %104 {strides = array<i32>} : memref<4x8x8xf32, #tpu.memory_space<vmem>>, vector<1x8x8xf32>,
      %c2_92 = arith.constant 2 : index
      %c0_93 = arith.constant 0 : index
      %c0_94 = arith.constant 0 : index
      %105 = vector.load %arg7[%c2_92, %c0_93, %c0_94] : memref<4x32x8xf32, #tpu.memory_space<vmem>>, vector<1x32x8xf32>
      %106 = vector.shape_cast %105 : vector<1x32x8xf32> to vector<32x8xf32>
      %cst_95 = arith.constant dense<0.000000e+00> : vector<8x8xf32>
      %107 = tpu.matmul %78, %106, %cst_95 {dimension_numbers = #tpu.dot_dimension_numbers<[1], [0], [0], [1], [0, 0, 1, 1], [], []>} : vector<8x32xf32>, vector<32x8xf32>, vector<8x8xf32> -> vector<8x8xf32>
      %c2_96 = arith.constant 2 : index
      %c0_97 = arith.constant 0 : index
      %c0_98 = arith.constant 0 : index
      %108 = vector.load %arg12[%c2_96, %c0_97, %c0_98] : memref<4x8x8xf32, #tpu.memory_space<vmem>>, vector<1x8x8xf32>
      %109 = vector.shape_cast %108 : vector<1x8x8xf32> to vector<8x8xf32>
      %110 = vector.shape_cast %107 : vector<8x8xf32> to vector<1x8x8xf32>
      tpu.vector_store %arg12[%c2_96, %c0_97, %c0_98], %110 {strides = array<i32>} : memref<4x8x8xf32, #tpu.memory_space<vmem>>, vector<1x8x8xf32>,
      %c2_99 = arith.constant 2 : index
      %c0_100 = arith.constant 0 : index
      %c0_101 = arith.constant 0 : index
      %111 = vector.load %arg8[%c2_99, %c0_100, %c0_101] : memref<4x32x8xf32, #tpu.memory_space<vmem>>, vector<1x32x8xf32>
      %112 = vector.shape_cast %111 : vector<1x32x8xf32> to vector<32x8xf32>
      %cst_102 = arith.constant dense<0.000000e+00> : vector<8x8xf32>
      %113 = tpu.matmul %80, %112, %cst_102 {dimension_numbers = #tpu.dot_dimension_numbers<[1], [0], [0], [1], [0, 0, 1, 1], [], []>} : vector<8x32xf32>, vector<32x8xf32>, vector<8x8xf32> -> vector<8x8xf32>
      %c2_103 = arith.constant 2 : index
      %c0_104 = arith.constant 0 : index
      %c0_105 = arith.constant 0 : index
      %114 = vector.load %arg13[%c2_103, %c0_104, %c0_105] : memref<4x8x8xf32, #tpu.memory_space<vmem>>, vector<1x8x8xf32>
      %115 = vector.shape_cast %114 : vector<1x8x8xf32> to vector<8x8xf32>
      %116 = vector.shape_cast %113 : vector<8x8xf32> to vector<1x8x8xf32>
      tpu.vector_store %arg13[%c2_103, %c0_104, %c0_105], %116 {strides = array<i32>} : memref<4x8x8xf32, #tpu.memory_space<vmem>>, vector<1x8x8xf32>,
      %c3_106 = arith.constant 3 : index
      %c0_107 = arith.constant 0 : index
      %c0_108 = arith.constant 0 : index
      %117 = vector.load %arg7[%c3_106, %c0_107, %c0_108] : memref<4x32x8xf32, #tpu.memory_space<vmem>>, vector<1x32x8xf32>
      %118 = vector.shape_cast %117 : vector<1x32x8xf32> to vector<32x8xf32>
      %cst_109 = arith.constant dense<0.000000e+00> : vector<8x8xf32>
      %119 = tpu.matmul %78, %118, %cst_109 {dimension_numbers = #tpu.dot_dimension_numbers<[1], [0], [0], [1], [0, 0, 1, 1], [], []>} : vector<8x32xf32>, vector<32x8xf32>, vector<8x8xf32> -> vector<8x8xf32>
      %c3_110 = arith.constant 3 : index
      %c0_111 = arith.constant 0 : index
      %c0_112 = arith.constant 0 : index
      %120 = vector.load %arg12[%c3_110, %c0_111, %c0_112] : memref<4x8x8xf32, #tpu.memory_space<vmem>>, vector<1x8x8xf32>
      %121 = vector.shape_cast %120 : vector<1x8x8xf32> to vector<8x8xf32>
      %122 = vector.shape_cast %119 : vector<8x8xf32> to vector<1x8x8xf32>
      tpu.vector_store %arg12[%c3_110, %c0_111, %c0_112], %122 {strides = array<i32>} : memref<4x8x8xf32, #tpu.memory_space<vmem>>, vector<1x8x8xf32>,
      %c3_113 = arith.constant 3 : index
      %c0_114 = arith.constant 0 : index
      %c0_115 = arith.constant 0 : index
      %123 = vector.load %arg8[%c3_113, %c0_114, %c0_115] : memref<4x32x8xf32, #tpu.memory_space<vmem>>, vector<1x32x8xf32>
      %124 = vector.shape_cast %123 : vector<1x32x8xf32> to vector<32x8xf32>
      %cst_116 = arith.constant dense<0.000000e+00> : vector<8x8xf32>
      %125 = tpu.matmul %80, %124, %cst_116 {dimension_numbers = #tpu.dot_dimension_numbers<[1], [0], [0], [1], [0, 0, 1, 1], [], []>} : vector<8x32xf32>, vector<32x8xf32>, vector<8x8xf32> -> vector<8x8xf32>
      %c3_117 = arith.constant 3 : index
      %c0_118 = arith.constant 0 : index
      %c0_119 = arith.constant 0 : index
      %126 = vector.load %arg13[%c3_117, %c0_118, %c0_119] : memref<4x8x8xf32, #tpu.memory_space<vmem>>, vector<1x8x8xf32>
      %127 = vector.shape_cast %126 : vector<1x8x8xf32> to vector<8x8xf32>
      %128 = vector.shape_cast %125 : vector<8x8xf32> to vector<1x8x8xf32>
      tpu.vector_store %arg13[%c3_117, %c0_118, %c0_119], %128 {strides = array<i32>} : memref<4x8x8xf32, #tpu.memory_space<vmem>>, vector<1x8x8xf32>,
    } else {
    }
    %c0 = arith.constant 0 : index
    %c0_1 = arith.constant 0 : index
    %c0_2 = arith.constant 0 : index
    %5 = vector.load %arg3[%c0, %c0_1, %c0_2] : memref<1x8x32xf32, #tpu.memory_space<vmem>>, vector<1x8x32xf32>
    %6 = vector.shape_cast %5 : vector<1x8x32xf32> to vector<8x32xf32>
    %c0_3 = arith.constant 0 : index
    %c0_4 = arith.constant 0 : index
    %c0_5 = arith.constant 0 : index
    %7 = vector.load %arg6[%c0_3, %c0_4, %c0_5] : memref<4x32x8xf32, #tpu.memory_space<vmem>>, vector<1x32x8xf32>
    %8 = vector.shape_cast %7 : vector<1x32x8xf32> to vector<32x8xf32>
    %cst = arith.constant dense<0.000000e+00> : vector<8x8xf32>
    %9 = tpu.matmul %6, %8, %cst {dimension_numbers = #tpu.dot_dimension_numbers<[1], [0], [0], [1], [0, 0, 1, 1], [], []>} : vector<8x32xf32>, vector<32x8xf32>, vector<8x8xf32> -> vector<8x8xf32>
    %cst_6 = arith.constant 0.353553385 : f32
    %10 = vector.broadcast %cst_6 : f32 to vector<8x8xf32>
    %11 = arith.mulf %9, %10 : vector<8x8xf32>
    %c0_7 = arith.constant 0 : index
    %c0_8 = arith.constant 0 : index
    %c0_9 = arith.constant 0 : index
    %12 = vector.load %arg11[%c0_7, %c0_8, %c0_9] : memref<4x8x8xf32, #tpu.memory_space<vmem>>, vector<1x8x8xf32>
    %13 = vector.shape_cast %12 : vector<1x8x8xf32> to vector<8x8xf32>
    %14 = vector.shape_cast %11 : vector<8x8xf32> to vector<1x8x8xf32>
    tpu.vector_store %arg11[%c0_7, %c0_8, %c0_9], %14 {strides = array<i32>} : memref<4x8x8xf32, #tpu.memory_space<vmem>>, vector<1x8x8xf32>,
    %c1 = arith.constant 1 : index
    %c0_10 = arith.constant 0 : index
    %c0_11 = arith.constant 0 : index
    %15 = vector.load %arg6[%c1, %c0_10, %c0_11] : memref<4x32x8xf32, #tpu.memory_space<vmem>>, vector<1x32x8xf32>
    %16 = vector.shape_cast %15 : vector<1x32x8xf32> to vector<32x8xf32>
    %cst_12 = arith.constant dense<0.000000e+00> : vector<8x8xf32>
    %17 = tpu.matmul %6, %16, %cst_12 {dimension_numbers = #tpu.dot_dimension_numbers<[1], [0], [0], [1], [0, 0, 1, 1], [], []>} : vector<8x32xf32>, vector<32x8xf32>, vector<8x8xf32> -> vector<8x8xf32>
    %cst_13 = arith.constant 0.353553385 : f32
    %18 = vector.broadcast %cst_13 : f32 to vector<8x8xf32>
    %19 = arith.mulf %17, %18 : vector<8x8xf32>
    %c1_14 = arith.constant 1 : index
    %c0_15 = arith.constant 0 : index
    %c0_16 = arith.constant 0 : index
    %20 = vector.load %arg11[%c1_14, %c0_15, %c0_16] : memref<4x8x8xf32, #tpu.memory_space<vmem>>, vector<1x8x8xf32>
    %21 = vector.shape_cast %20 : vector<1x8x8xf32> to vector<8x8xf32>
    %22 = vector.shape_cast %19 : vector<8x8xf32> to vector<1x8x8xf32>
    tpu.vector_store %arg11[%c1_14, %c0_15, %c0_16], %22 {strides = array<i32>} : memref<4x8x8xf32, #tpu.memory_space<vmem>>, vector<1x8x8xf32>,
    %c2 = arith.constant 2 : index
    %c0_17 = arith.constant 0 : index
    %c0_18 = arith.constant 0 : index
    %23 = vector.load %arg6[%c2, %c0_17, %c0_18] : memref<4x32x8xf32, #tpu.memory_space<vmem>>, vector<1x32x8xf32>
    %24 = vector.shape_cast %23 : vector<1x32x8xf32> to vector<32x8xf32>
    %cst_19 = arith.constant dense<0.000000e+00> : vector<8x8xf32>
    %25 = tpu.matmul %6, %24, %cst_19 {dimension_numbers = #tpu.dot_dimension_numbers<[1], [0], [0], [1], [0, 0, 1, 1], [], []>} : vector<8x32xf32>, vector<32x8xf32>, vector<8x8xf32> -> vector<8x8xf32>
    %cst_20 = arith.constant 0.353553385 : f32
    %26 = vector.broadcast %cst_20 : f32 to vector<8x8xf32>
    %27 = arith.mulf %25, %26 : vector<8x8xf32>
    %c2_21 = arith.constant 2 : index
    %c0_22 = arith.constant 0 : index
    %c0_23 = arith.constant 0 : index
    %28 = vector.load %arg11[%c2_21, %c0_22, %c0_23] : memref<4x8x8xf32, #tpu.memory_space<vmem>>, vector<1x8x8xf32>
    %29 = vector.shape_cast %28 : vector<1x8x8xf32> to vector<8x8xf32>
    %30 = vector.shape_cast %27 : vector<8x8xf32> to vector<1x8x8xf32>
    tpu.vector_store %arg11[%c2_21, %c0_22, %c0_23], %30 {strides = array<i32>} : memref<4x8x8xf32, #tpu.memory_space<vmem>>, vector<1x8x8xf32>,
    %c3 = arith.constant 3 : index
    %c0_24 = arith.constant 0 : index
    %c0_25 = arith.constant 0 : index
    %31 = vector.load %arg6[%c3, %c0_24, %c0_25] : memref<4x32x8xf32, #tpu.memory_space<vmem>>, vector<1x32x8xf32>
    %32 = vector.shape_cast %31 : vector<1x32x8xf32> to vector<32x8xf32>
    %cst_26 = arith.constant dense<0.000000e+00> : vector<8x8xf32>
    %33 = tpu.matmul %6, %32, %cst_26 {dimension_numbers = #tpu.dot_dimension_numbers<[1], [0], [0], [1], [0, 0, 1, 1], [], []>} : vector<8x32xf32>, vector<32x8xf32>, vector<8x8xf32> -> vector<8x8xf32>
    %cst_27 = arith.constant 0.353553385 : f32
    %34 = vector.broadcast %cst_27 : f32 to vector<8x8xf32>
    %35 = arith.mulf %33, %34 : vector<8x8xf32>
    %c3_28 = arith.constant 3 : index
    %c0_29 = arith.constant 0 : index
    %c0_30 = arith.constant 0 : index
    %36 = vector.load %arg11[%c3_28, %c0_29, %c0_30] : memref<4x8x8xf32, #tpu.memory_space<vmem>>, vector<1x8x8xf32>
    %37 = vector.shape_cast %36 : vector<1x8x8xf32> to vector<8x8xf32>
    %38 = vector.shape_cast %35 : vector<8x8xf32> to vector<1x8x8xf32>
    tpu.vector_store %arg11[%c3_28, %c0_29, %c0_30], %38 {strides = array<i32>} : memref<4x8x8xf32, #tpu.memory_space<vmem>>, vector<1x8x8xf32>,
    %c0_31 = arith.constant 0 : index
    %c0_32 = arith.constant 0 : index
    %c0_33 = arith.constant 0 : index
    %39 = vector.load %arg11[%c0_31, %c0_32, %c0_33] : memref<4x8x8xf32, #tpu.memory_space<vmem>>, vector<4x8x8xf32>
    %c0_34 = arith.constant 0 : index
    %c0_35 = arith.constant 0 : index
    %c0_36 = arith.constant 0 : index
    %40 = vector.load %arg12[%c0_34, %c0_35, %c0_36] : memref<4x8x8xf32, #tpu.memory_space<vmem>>, vector<4x8x8xf32>
    %c0_37 = arith.constant 0 : index
    %c0_38 = arith.constant 0 : index
    %c0_39 = arith.constant 0 : index
    %41 = vector.load %arg13[%c0_37, %c0_38, %c0_39] : memref<4x8x8xf32, #tpu.memory_space<vmem>>, vector<4x8x8xf32>
    "tpu.trace_start"() <{level = 10 : i32, message = "hqd,hkd->hqk"}> : () -> ()
    %cst_40 = arith.constant dense<0.000000e+00> : vector<4x8x8xf32>
    %42 = tpu.matmul %39, %40, %cst_40 {dimension_numbers = #tpu.dot_dimension_numbers<[2], [2], [1], [1], [0, 0, 0, 1, 1, 1], [0], [0]>} : vector<4x8x8xf32>, vector<4x8x8xf32>, vector<4x8x8xf32> -> vector<4x8x8xf32>
    "tpu.trace_stop"() : () -> ()
    %43 = tpu.iota {dimensions = array<i32: 2>} : vector<4x8x8xi32>
    %44 = vector.broadcast %1 : i32 to vector<4x8x8xi32>
    %45 = arith.cmpi slt, %43, %44 : vector<4x8x8xi32>
    %cst_41 = arith.constant -1.000000e+06 : f32
    %46 = vector.broadcast %cst_41 : f32 to vector<4x8x8xf32>
    %47 = arith.select %45, %42, %46 : vector<4x8x8xi1>, vector<4x8x8xf32>
    %cst_42 = arith.constant dense<0xFF800000> : vector<4x8xf32>
    %48 = vector.multi_reduction <maximumf>, %47, %cst_42 [2] : vector<4x8x8xf32> to vector<4x8xf32>
    %49 = vector.shape_cast %48 : vector<4x8xf32> to vector<4x8x1xf32>
    %50 = vector.broadcast %49 : vector<4x8x1xf32> to vector<4x8x8xf32>
    %51 = arith.subf %47, %50 : vector<4x8x8xf32>
    %52 = math.exp %51 : vector<4x8x8xf32>
    %cst_43 = arith.constant dense<0.000000e+00> : vector<4x8xf32>
    %53 = vector.multi_reduction <add>, %52, %cst_43 [2] : vector<4x8x8xf32> to vector<4x8xf32>
    %54 = vector.shape_cast %53 : vector<4x8xf32> to vector<4x8x1xf32>
    %55 = tpu.reciprocal %54 : vector<4x8x1xf32> -> vector<4x8x1xf32>
    %56 = vector.broadcast %55 : vector<4x8x1xf32> to vector<4x8x8xf32>
    %57 = arith.mulf %52, %56 : vector<4x8x8xf32>
    "tpu.trace_start"() <{level = 10 : i32, message = "hqk,hkd->hqd"}> : () -> ()
    %cst_44 = arith.constant dense<0.000000e+00> : vector<4x8x8xf32>
    %58 = tpu.matmul %57, %41, %cst_44 {dimension_numbers = #tpu.dot_dimension_numbers<[2], [1], [1], [2], [0, 0, 0, 1, 1, 2], [0], [0]>} : vector<4x8x8xf32>, vector<4x8x8xf32>, vector<4x8x8xf32> -> vector<4x8x8xf32>
    "tpu.trace_stop"() : () -> ()
    %59 = vector.extract_strided_slice %58 {offsets = [0, 0, 0], sizes = [1, 8, 8], strides = [1, 1, 1]} : vector<4x8x8xf32> to vector<1x8x8xf32>
    %60 = vector.shape_cast %59 : vector<1x8x8xf32> to vector<8x8xf32>
    %c0_45 = arith.constant 0 : index
    %c0_46 = arith.constant 0 : index
    %61 = vector.load %arg14[%c0_45, %c0_46] : memref<8x32xf32, #tpu.memory_space<vmem>>, vector<8x8xf32>
    tpu.vector_store %arg14[%c0_45, %c0_46], %60 {strides = array<i32>} : memref<8x32xf32, #tpu.memory_space<vmem>>, vector<8x8xf32>,
    %62 = vector.extract_strided_slice %58 {offsets = [1, 0, 0], sizes = [1, 8, 8], strides = [1, 1, 1]} : vector<4x8x8xf32> to vector<1x8x8xf32>
    %63 = vector.shape_cast %62 : vector<1x8x8xf32> to vector<8x8xf32>
    %c0_47 = arith.constant 0 : index
    %c8 = arith.constant 8 : index
    %64 = vector.load %arg14[%c0_47, %c8] : memref<8x32xf32, #tpu.memory_space<vmem>>, vector<8x8xf32>
    tpu.vector_store %arg14[%c0_47, %c8], %63 {strides = array<i32>} : memref<8x32xf32, #tpu.memory_space<vmem>>, vector<8x8xf32>,
    %65 = vector.extract_strided_slice %58 {offsets = [2, 0, 0], sizes = [1, 8, 8], strides = [1, 1, 1]} : vector<4x8x8xf32> to vector<1x8x8xf32>
    %66 = vector.shape_cast %65 : vector<1x8x8xf32> to vector<8x8xf32>
    %c0_48 = arith.constant 0 : index
    %c16 = arith.constant 16 : index
    %67 = vector.load %arg14[%c0_48, %c16] : memref<8x32xf32, #tpu.memory_space<vmem>>, vector<8x8xf32>
    tpu.vector_store %arg14[%c0_48, %c16], %66 {strides = array<i32>} : memref<8x32xf32, #tpu.memory_space<vmem>>, vector<8x8xf32>,
    %68 = vector.extract_strided_slice %58 {offsets = [3, 0, 0], sizes = [1, 8, 8], strides = [1, 1, 1]} : vector<4x8x8xf32> to vector<1x8x8xf32>
    %69 = vector.shape_cast %68 : vector<1x8x8xf32> to vector<8x8xf32>
    %c0_49 = arith.constant 0 : index
    %c24 = arith.constant 24 : index
    %70 = vector.load %arg14[%c0_49, %c24] : memref<8x32xf32, #tpu.memory_space<vmem>>, vector<8x8xf32>
    tpu.vector_store %arg14[%c0_49, %c24], %69 {strides = array<i32>} : memref<8x32xf32, #tpu.memory_space<vmem>>, vector<8x8xf32>,
    %c0_50 = arith.constant 0 : index
    %c0_51 = arith.constant 0 : index
    %71 = vector.load %arg14[%c0_50, %c0_51] : memref<8x32xf32, #tpu.memory_space<vmem>>, vector<8x32xf32>
    %c0_52 = arith.constant 0 : index
    %c0_53 = arith.constant 0 : index
    %72 = vector.load %arg9[%c0_52, %c0_53] : memref<32x32xf32, #tpu.memory_space<vmem>>, vector<32x32xf32>
    %cst_54 = arith.constant dense<0.000000e+00> : vector<8x32xf32>
    %73 = tpu.matmul %71, %72, %cst_54 {dimension_numbers = #tpu.dot_dimension_numbers<[1], [0], [0], [1], [0, 0, 1, 1], [], []>} : vector<8x32xf32>, vector<32x32xf32>, vector<8x32xf32> -> vector<8x32xf32>
    %c0_55 = arith.constant 0 : index
    %c0_56 = arith.constant 0 : index
    %c0_57 = arith.constant 0 : index
    %74 = vector.load %arg10[%c0_55, %c0_56, %c0_57] : memref<1x8x32xf32, #tpu.memory_space<vmem>>, vector<1x8x32xf32>
    %75 = vector.shape_cast %74 : vector<1x8x32xf32> to vector<8x32xf32>
    %76 = vector.shape_cast %73 : vector<8x32xf32> to vector<1x8x32xf32>
    tpu.vector_store %arg10[%c0_55, %c0_56, %c0_57], %76 {strides = array<i32>} : memref<1x8x32xf32, #tpu.memory_space<vmem>>, vector<1x8x32xf32>,
    return
  }
  func.func @transform_0(%arg0: i32, %arg1: i32, %arg2: memref<2xi32, #tpu.memory_space<smem>>) -> (i32, i32, i32) {
    %c0_i32 = arith.constant 0 : i32
    %c0_i32_0 = arith.constant 0 : i32
    return %arg0, %arg1, %c0_i32 : i32, i32, i32
  }
  func.func @transform_1(%arg0: i32, %arg1: i32, %arg2: memref<2xi32, #tpu.memory_space<smem>>) -> (i32, i32, i32) {
    %c0_i32 = arith.constant 0 : i32
    %c0_i32_0 = arith.constant 0 : i32
    %c0_i32_1 = arith.constant 0 : i32
    return %arg0, %c0_i32, %c0_i32_0 : i32, i32, i32
  }
  func.func @transform_2(%arg0: i32, %arg1: i32, %arg2: memref<2xi32, #tpu.memory_space<smem>>) -> (i32, i32, i32) {
    %c0_i32 = arith.constant 0 : i32
    %c0_i32_0 = arith.constant 0 : i32
    %c0_i32_1 = arith.constant 0 : i32
    return %arg0, %c0_i32, %c0_i32_0 : i32, i32, i32
  }
  func.func @transform_3(%arg0: i32, %arg1: i32, %arg2: memref<2xi32, #tpu.memory_space<smem>>) -> (i32, i32, i32) {
    %c0_i32 = arith.constant 0 : i32
    %c0_i32_0 = arith.constant 0 : i32
    %c0_i32_1 = arith.constant 0 : i32
    %c0_i32_2 = arith.constant 0 : i32
    return %c0_i32, %c0_i32_0, %c0_i32_1 : i32, i32, i32
  }
  func.func @transform_4(%arg0: i32, %arg1: i32, %arg2: memref<2xi32, #tpu.memory_space<smem>>) -> (i32, i32, i32) {
    %c0_i32 = arith.constant 0 : i32
    %c0_i32_0 = arith.constant 0 : i32
    %c0_i32_1 = arith.constant 0 : i32
    %c0_i32_2 = arith.constant 0 : i32
    return %c0_i32, %c0_i32_0, %c0_i32_1 : i32, i32, i32
  }
  func.func @transform_5(%arg0: i32, %arg1: i32, %arg2: memref<2xi32, #tpu.memory_space<smem>>) -> (i32, i32, i32) {
    %c0_i32 = arith.constant 0 : i32
    %c0_i32_0 = arith.constant 0 : i32
    %c0_i32_1 = arith.constant 0 : i32
    %c0_i32_2 = arith.constant 0 : i32
    return %c0_i32, %c0_i32_0, %c0_i32_1 : i32, i32, i32
  }
  func.func @transform_6(%arg0: i32, %arg1: i32, %arg2: memref<2xi32, #tpu.memory_space<smem>>) -> (i32, i32) {
    %c0_i32 = arith.constant 0 : i32
    %c0_i32_0 = arith.constant 0 : i32
    %c0_i32_1 = arith.constant 0 : i32
    return %c0_i32, %c0_i32_0 : i32, i32
  }
  func.func @transform_7(%arg0: i32, %arg1: i32, %arg2: memref<2xi32, #tpu.memory_space<smem>>) -> (i32, i32, i32) {
    %c0_i32 = arith.constant 0 : i32
    %c0_i32_0 = arith.constant 0 : i32
    return %arg0, %arg1, %c0_i32 : i32, i32, i32
  }
}

</mosaic_0001>

<bundles_post_ra>
// kernel: tpu_custom_call.1
= control target key start
LH: loop header
LB: loop body
LE: loop exit
PB: predicated region body
PF: predicated region fallthrough
CT: control target
= control target key end

     0   :  { %s3153_s0 = inlined_call_operand.vmem [shape: s32[2], index: 0, kind: input, shape index: {}]   ;;  %s3154_s1 = inlined_call_operand.vmem [shape: f32[2,8,32], index: 1, kind: input, shape index: {}]   ;;  %s3155_s2 = inlined_call_operand.vmem [shape: f32[2,8,32], index: 2, kind: input, shape index: {}]   ;;  %s3156_s3 = inlined_call_operand.vmem [shape: f32[2,8,32], index: 3, kind: input, shape index: {}]   ;;  %s3157_s4 = inlined_call_operand.vmem [shape: f32[4,32,8], index: 4, kind: input, shape index: {}]   ;;  %s3158_s5 = inlined_call_operand.vmem [shape: f32[4,32,8], index: 5, kind: input, shape index: {}]   ;;  %s3159_s6 = inlined_call_operand.vmem [shape: f32[4,32,8], index: 6, kind: input, shape index: {}]   ;;  %s3160_s7 = inlined_call_operand.vmem [shape: f32[32,32], index: 7, kind: input, shape index: {}]   ;;  %s3161_s8 = inlined_call_operand.hbm [shape: f32[2,8,32], index: 8, kind: output, shape index: {}]  }
   0x1   :  { %s13_s29 = sshll.u32 %s3153_s0, 4  ;;  %s14_s29 = int_to_ptr.vmem [resolvable:$true] %s13_s29 }
   0x2   :  { %s2566_s30 = scalar_lea.vmem %s14_s29, 16  ;;  %p2571_p1 = scmp.lt.s32.totalorder %s14_s29, %s14_s29 }
   0x3   :  { %p2567_p0 = scmp.ne.s32.totalorder %s14_s29, %s2566_s30  ;;  %p2572_p2 = scmp.lt.s32.totalorder %s2566_s30, %s2566_s30 }
   0x5   :  { %p2573_p3 = por %p2572_p2, %p2571_p1 }
   0x7   :  { %p2574_p4 = pnand %p2573_p3, %p2567_p0 }
   0x9   :  { %2577 = shalt.err (!%p2574_p4)  }
   0xa   :  { %s2658_s9 = smov [#allocation7]  }
   0xb   :  { %16 = dma.vmem_to_smem %s14_s29, 16, %s2658_s9, [#allocation6] }
   0xc   :  { %2628 = dma.done.wait [#allocation6], 16 }
   0xd   :  { %2629 = vsyncadd [#allocation6], 4294967280 }
   0xe   :  { %18 = sfence }
   0xf   :  { %19 = vsyncpa [#allocation9], 0 }
  0x10   :  { %21 = vsyncpa [#allocation9 + $0x1], 0  ;;  %s2713_s10 = smov 0   ;;  %s2715_s11 = smov 0  }
  0x11   :  { %s2717_s0 = smov 0   ;;  %s2719_s12 = smov 0  }
  0x12   :  { %s2721_s13 = smov 0   ;;  %s2723_s14 = smov 0  }
  0x13 LB: > { %s2151_s15 = sadd.s32 4294967295, %s2656_s14   ;;  %s2152_s16 = sadd.s32 4294967294, %s2656_s14   ;;  %s2656_s14 = sphi %s2723_s14, %s27_s14   ;;  %s2652_s13 = sphi %s2721_s13, %s3168_s13   ;;  %s2648_s12 = sphi %s2719_s12, %s3167_s12   ;;  %s2644_s0 = sphi %s2717_s0, %s3166_s0   ;;  %s2640_s11 = sphi %s2715_s11, %s3165_s11   ;;  %s2636_s10 = sphi %s2713_s10, %s3164_s10  }
  0x14   : > { %s39_s17 = sadd.s32 1, %s2652_s13  ;;  %s212_s18 = sadd.s32 1, %s2644_s0 }
  0x15   : > { %p41_p5 = scmp.ge.s32.totalorder %s39_s17, 2  ;;  %p222_p6 = scmp.ne.s32.totalorder %s2644_s0, %s2640_s11 }
  0x16   : > { %p223_p7 = scmp.eq.s32.totalorder %s2151_s15, 1  ;;  %p228_p8 = scmp.ne.s32.totalorder %s2640_s11, %s2636_s10 }
  0x17   : > { %s3170_s17 = smov (%p41_p5, %s39_s17), 0  ;;  %p229_p10 = scmp.eq.s32.totalorder %s2152_s16, 1 }
  0x18   : > { %p2753_p9 = por %p223_p7, %p222_p6  ;;  %s207_s20 = ssub.s32 %s2652_s13, %s3170_s17 }
  0x19   : > { %p2155_p11 = scmp.ge.s32.totalorder %s2656_s14, 1  ;;  %p210_p12 = scmp.eq.s32.totalorder %s207_s20, 0 }
  0x1a   : > { %p2760_p13 = por %p229_p10, %p228_p8  ;;  %p283_p0 = scmp.lt.s32.totalorder %s2656_s14, 3 }
  0x1b   : > { %s2766_s22 = scalar_select %p210_p12, %s2644_s0, %s212_s18  }
  0x1c   : > { %p284_p1 = pnand %p2155_p11, %p283_p0 }
  0x1d   : > { %p325_p2 = scmp.lt.s32.totalorder (!%p284_p1), %s2648_s12, 1  ;;  %s2663_s29 = smov (!%p284_p1), 24  }
  0x1e   : > { %287 = sbr.rel (%p284_p1) target bundleno = 1331 (0x533), region = 48  ;;  %s322_s30 = sand.u32 (!%p284_p1), 1, %s2640_s11  }
  0x1f   : > { %s2042_s26 = scalar_lea.sflag (!%p284_p1), [#allocation9], %s322_s30 }
  0x23   : > { %v350_v0 = vld [vmem:[%s3158_s5 + $0x18] sm:$0xff]  ;;  %v2659_v2 = vmov 0.0   ;;  %v349_v3 = vld [vmem:[%s3158_s5 + $0x10] sm:$0xff]  ;;  %s326_s9 = scalar_select %p325_p2, %s2648_s12, 1  ;;  %v348_v5 = vld [vmem:[%s3158_s5 + $0x8] sm:$0xff]  ;;  %vm351_vm0 = vcmask 261120  }
  0x24   : > { %v430_v1 = vld [vmem:[%s3159_s6 + $0x18] sm:$0xff]  ;;  %2306 = vmatprep.subr.mxu0 %v2659_v2  ;;  %2317 = vmatprep.subr.mxu1 %v2659_v2  ;;  %v429_v4 = vld [vmem:[%s3159_s6 + $0x10] sm:$0xff]  ;;  %v428_v6 = vld [vmem:[%s3159_s6 + $0x8] sm:$0xff]  ;;  %vm2660_vm1 = vmmov 0   ;;  %vm425_vm2 = vcmask 64512   ;;  %vm1948_vm4 = vcmask 130112  }
  0x25   : > { %2307 = vmatpush3.msra.mxu0 %v350_v0  ;;  %2318 = vmatpush3.msra.mxu1 %v430_v1  ;;  %s2792_s23 = sshll.u32 %s326_s9, 3  ;;  %v347_v7 = vld [vmem:[%s3158_s5] sm:$0xff]  ;;  %v2165_v11 = vld [vmem:[%s3158_s5 + $0x38] sm:$0xff]  ;;  %v2164_v13 = vld [vmem:[%s3158_s5 + $0x30] sm:$0xff]  ;;  %vm1954_vm5 = vcmask 195712   ;;  %vm1960_vm6 = vcmask 261312  }
  0x26   : > { %2308 = vmatprep.subr.mxu0 %v2659_v2  ;;  %2319 = vmatprep.subr.mxu1 %v2659_v2  ;;  %s335_s28 = scalar_lea.vmem %s3155_s2, %s2792_s23  ;;  %s339_s15 = scalar_lea.vmem %s3156_s3, %s2792_s23  ;;  %v427_v8 = vld [vmem:[%s3159_s6] sm:$0xff]  ;;  %v2170_v12 = vld [vmem:[%s3159_s6 + $0x38] sm:$0xff]  ;;  %v2169_v14 = vld [vmem:[%s3159_s6 + $0x30] sm:$0xff] }
  0x27   : > { %2309 = vmatpush3.msra.mxu0 %v349_v3  ;;  %2320 = vmatpush3.msra.mxu1 %v429_v4  ;;  %v2810_v9 = vld [vmem:[%s335_s28] sm:$0xff]  ;;  %v2163_v15 = vld [vmem:[%s3158_s5 + $0x28] sm:$0xff]  ;;  %v2175_v19 = vld [vmem:[%s3158_s5 + $0x58] sm:$0xff]  ;;  %s331_s24 = scalar_lea.vmem %s3154_s1, %s2792_s23  ;;  %s2662_s23 = smov 16  }
  0x28   : > { %2310 = vmatprep.subr.mxu0 %v2659_v2  ;;  %2321 = vmatprep.subr.mxu1 %v2659_v2  ;;  %v2816_v10 = vld [vmem:[%s339_s15] sm:$0xff]  ;;  %v2168_v16 = vld [vmem:[%s3159_s6 + $0x28] sm:$0xff]  ;;  %v2180_v20 = vld [vmem:[%s3159_s6 + $0x58] sm:$0xff]  ;;  %s340_s15 = sld [smem:[#allocation7 + %s2648_s12]]  ;;  %s2222_s9 = sshll.u32 %s2648_s12, 7 }
  0x29   : > { %2311 = vmatpush3.msra.mxu0 %v348_v5  ;;  %2322 = vmatpush3.msra.mxu1 %v428_v6  ;;  %v2162_v17 = vld [vmem:[%s3158_s5 + $0x20] sm:$0xff]  ;;  %v2174_v21 = vld [vmem:[%s3158_s5 + $0x50] sm:$0xff]  ;;  %v2173_v23 = vld [vmem:[%s3158_s5 + $0x48] sm:$0xff]  ;;  %s3106_s25 = scalar_lea.hbm %s3161_s8, %s2222_s9  ;;  %s2664_s12 = smov [#allocation8]  }
  0x2a   : > { %2312 = vmatprep.subr.mxu0 %v2659_v2  ;;  %2323 = vmatprep.subr.mxu1 %v2659_v2  ;;  %v2167_v18 = vld [vmem:[%s3159_s6 + $0x20] sm:$0xff]  ;;  %v2179_v22 = vld [vmem:[%s3159_s6 + $0x50] sm:$0xff]  ;;  %v2178_v24 = vld [vmem:[%s3159_s6 + $0x48] sm:$0xff]  ;;  %s2582_s28 = sshll.u32 %s2664_s12, 4  ;;  %s2583_s28 = int_to_ptr.vmem [resolvable:$false] %s2582_s28 }
  0x2b   : > { %2313 = vmatpush3.msra.mxu0 %v347_v7  ;;  %2314 = vmatprep.mubr.msk.f32.mxu0 %vm2660_vm1, %v2659_v2  ;;  %v2172_v25 = vld [vmem:[%s3158_s5 + $0x40] sm:$0xff]  ;;  %v2185_v27 = vld [vmem:[%s3158_s5 + $0x78] sm:$0xff]  ;;  %v2184_v29 = vld [vmem:[%s3158_s5 + $0x70] sm:$0xff] }
  0x2c   : > { %2324 = vmatpush3.msra.mxu1 %v427_v8  ;;  %2315 = vmatmul.mubr.msk.f32.vlgmr.msra.gmra.mxu0 %vm351_vm0, %v2810_v9  ;;  %v2177_v26 = vld [vmem:[%s3159_s6 + $0x40] sm:$0xff]  ;;  %v2190_v28 = vld [vmem:[%s3159_s6 + $0x78] sm:$0xff]  ;;  %v2189_v30 = vld [vmem:[%s3159_s6 + $0x70] sm:$0xff] }
  0x2d   : > { %2325 = vmatprep.mubr.msk.f32.mxu1 %vm2660_vm1, %v2659_v2  ;;  %2328 = vmatprep.subr.mxu0 %v2659_v2  ;;  %v2183_v31 = vld [vmem:[%s3158_s5 + $0x68] sm:$0xff]  ;;  %v2182_v33 = vld [vmem:[%s3158_s5 + $0x60] sm:$0xff]  ;;  %v971_v35 = vld [vmem:[%s3157_s4 + $0x18] sm:$0xff] }
  0x2e   : > { %2339 = vmatprep.subr.mxu1 %v2659_v2  ;;  %2326 = vmatmul.mubr.msk.f32.vlgmr.msra.gmra.mxu1 %vm351_vm0, %v2816_v10  ;;  %v2188_v32 = vld [vmem:[%s3159_s6 + $0x68] sm:$0xff]  ;;  %v2187_v34 = vld [vmem:[%s3159_s6 + $0x60] sm:$0xff]  ;;  %v2196_v36 = vld [vmem:[%s3157_s4 + $0x38] sm:$0xff] }
  0x2f   : > { %2329 = vmatpush3.msra.mxu0 %v2165_v11  ;;  %2340 = vmatpush3.msra.mxu1 %v2170_v12  ;;  %v970_v37 = vld [vmem:[%s3157_s4 + $0x10] sm:$0xff]  ;;  %v969_v39 = vld [vmem:[%s3157_s4 + $0x8] sm:$0xff]  ;;  %v968_v41 = vld [vmem:[%s3157_s4] sm:$0xff] }
  0x30   : > { %2330 = vmatprep.subr.mxu0 %v2659_v2  ;;  %2341 = vmatprep.subr.mxu1 %v2659_v2  ;;  %v2195_v38 = vld [vmem:[%s3157_s4 + $0x30] sm:$0xff]  ;;  %v2194_v40 = vld [vmem:[%s3157_s4 + $0x28] sm:$0xff]  ;;  %v2193_v42 = vld [vmem:[%s3157_s4 + $0x20] sm:$0xff] }
  0x31   : > { %2331 = vmatpush3.msra.mxu0 %v2164_v13  ;;  %2342 = vmatpush3.msra.mxu1 %v2169_v14  ;;  %v967_v43 = vld [vmem:[%s331_s24] sm:$0xff]  ;;  %v2201_v44 = vld [vmem:[%s3157_s4 + $0x58] sm:$0xff]  ;;  %v2200_v46 = vld [vmem:[%s3157_s4 + $0x50] sm:$0xff]  ;;  %s2661_s24 = smov 8  }
  0x32   : > { %2332 = vmatprep.subr.mxu0 %v2659_v2  ;;  %2343 = vmatprep.subr.mxu1 %v2659_v2  ;;  %v2206_v45 = vld [vmem:[%s3157_s4 + $0x78] sm:$0xff]  ;;  %v2205_v47 = vld [vmem:[%s3157_s4 + $0x70] sm:$0xff]  ;;  %v2199_v48 = vld [vmem:[%s3157_s4 + $0x48] sm:$0xff] }
  0x33   : > { %2333 = vmatpush3.msra.mxu0 %v2163_v15  ;;  %2344 = vmatpush3.msra.mxu1 %v2168_v16  ;;  %v2204_v49 = vld [vmem:[%s3157_s4 + $0x68] sm:$0xff]  ;;  %v2198_v50 = vld [vmem:[%s3157_s4 + $0x40] sm:$0xff] }
  0x34   : > { %2334 = vmatprep.subr.mxu0 %v2659_v2  ;;  %2345 = vmatprep.subr.mxu1 %v2659_v2  ;;  %v2203_v51 = vld [vmem:[%s3157_s4 + $0x60] sm:$0xff] }
  0x35   : > { %2335 = vmatpush3.msra.mxu0 %v2162_v17  ;;  %2336 = vmatprep.mubr.msk.f32.mxu0 %vm2660_vm1, %v2659_v2 }
  0x36   : > { %2346 = vmatpush3.msra.mxu1 %v2167_v18  ;;  %2337 = vmatmul.mubr.msk.f32.vlgmr.msra.gmra.mxu0 %vm351_vm0, %v2810_v9 }
  0x37   : > { %2347 = vmatprep.mubr.msk.f32.mxu1 %vm2660_vm1, %v2659_v2  ;;  %2350 = vmatprep.subr.mxu0 %v2659_v2 }
  0x38   : > { %2361 = vmatprep.subr.mxu1 %v2659_v2  ;;  %2348 = vmatmul.mubr.msk.f32.vlgmr.msra.gmra.mxu1 %vm351_vm0, %v2816_v10 }
  0x39   : > { %2351 = vmatpush3.msra.mxu0 %v2175_v19  ;;  %2362 = vmatpush3.msra.mxu1 %v2180_v20 }
  0x3a   : > { %2352 = vmatprep.subr.mxu0 %v2659_v2  ;;  %2363 = vmatprep.subr.mxu1 %v2659_v2 }
  0x3b   : > { %2353 = vmatpush3.msra.mxu0 %v2174_v21  ;;  %2364 = vmatpush3.msra.mxu1 %v2179_v22 }
  0x3c   : > { %2354 = vmatprep.subr.mxu0 %v2659_v2  ;;  %2365 = vmatprep.subr.mxu1 %v2659_v2 }
  0x3d   : > { %2355 = vmatpush3.msra.mxu0 %v2173_v23  ;;  %2366 = vmatpush3.msra.mxu1 %v2178_v24 }
  0x3e   : > { %2356 = vmatprep.subr.mxu0 %v2659_v2  ;;  %2367 = vmatprep.subr.mxu1 %v2659_v2 }
  0x3f   : > { %2357 = vmatpush3.msra.mxu0 %v2172_v25  ;;  %2358 = vmatprep.mubr.msk.f32.mxu0 %vm2660_vm1, %v2659_v2 }
  0x40   : > { %2368 = vmatpush3.msra.mxu1 %v2177_v26  ;;  %2359 = vmatmul.mubr.msk.f32.vlgmr.msra.gmra.mxu0 %vm351_vm0, %v2810_v9 }
  0x41   : > { %2369 = vmatprep.mubr.msk.f32.mxu1 %vm2660_vm1, %v2659_v2  ;;  %2372 = vmatprep.subr.mxu0 %v2659_v2 }
  0x42   : > { %2383 = vmatprep.subr.mxu1 %v2659_v2  ;;  %2370 = vmatmul.mubr.msk.f32.vlgmr.msra.gmra.mxu1 %vm351_vm0, %v2816_v10 }
  0x43   : > { %2373 = vmatpush3.msra.mxu0 %v2185_v27  ;;  %2384 = vmatpush3.msra.mxu1 %v2190_v28  ;;  %v1599_v27 = vlaneseq }
  0x44   : > { %2374 = vmatprep.subr.mxu0 %v2659_v2  ;;  %2385 = vmatprep.subr.mxu1 %v2659_v2 }
  0x45   : > { %2375 = vmatpush3.msra.mxu0 %v2184_v29  ;;  %2386 = vmatpush3.msra.mxu1 %v2189_v30  ;;  %v1600_v28 = vand.u32 127, %v1599_v27  ;;  %v1601_v29 = vstv %s340_s15  ;;  %s2156_s15 = sshll.u32 %s322_s30, 3 }
  0x46   : > { %2376 = vmatprep.subr.mxu0 %v2659_v2  ;;  %2387 = vmatprep.subr.mxu1 %v2659_v2  ;;  %s324_s16 = scalar_lea.vmem [#allocation8], %s2156_s15 }
  0x47   : > { %2377 = vmatpush3.msra.mxu0 %v2183_v31  ;;  %2388 = vmatpush3.msra.mxu1 %v2188_v32  ;;  %vm1602_vm3 = vcmp.lt.s32.totalorder %v1600_v28, %v1601_v29  ;;  %s2056_s18 = sshll.u32 %s324_s16, 4  ;;  %s3108_s18 = int_to_ptr.vmem [resolvable:$true] %s2056_s18 }
  0x48   : > { %2378 = vmatprep.subr.mxu0 %v2659_v2  ;;  %2389 = vmatprep.subr.mxu1 %v2659_v2  ;;  %s2578_s27 = scalar_lea.vmem %s3108_s18, 128  ;;  %p2585_p6 = scmp.lt.s32.totalorder %s3108_s18, %s2583_s28 }
  0x49   : > { %2379 = vmatpush3.msra.mxu0 %v2182_v33  ;;  %2380 = vmatprep.mubr.msk.f32.mxu0 %vm2660_vm1, %v2659_v2  ;;  %p2579_p3 = scmp.ne.s32.totalorder %s3108_s18, %s2578_s27 }
  0x4a   : > { %2390 = vmatpush3.msra.mxu1 %v2187_v34  ;;  %2381 = vmatmul.mubr.msk.f32.vlgmr.msra.gmra.mxu0 %vm351_vm0, %v2810_v9 }
  0x4b   : > { %2391 = vmatprep.mubr.msk.f32.mxu1 %vm2660_vm1, %v2659_v2  ;;  %2394 = vmatprep.subr.mxu0 %v2659_v2  ;;  %p2580_p4 = pnand %p2579_p3, %p2753_p9 }
  0x4c   : > { %2405 = vmatprep.subr.mxu1 %v2659_v2  ;;  %2392 = vmatmul.mubr.msk.f32.vlgmr.msra.gmra.mxu1 %vm351_vm0, %v2816_v10 }
  0x4d   : > { %2395 = vmatpush3.msra.mxu0 %v971_v35  ;;  %2406 = vmatpush3.msra.mxu1 %v2196_v36  ;;  %p2581_p5 = pneg %p2580_p4 }
  0x4e   : > { %2396 = vmatprep.subr.mxu0 %v2659_v2  ;;  %2407 = vmatprep.subr.mxu1 %v2659_v2 }
  0x4f   : > { %2397 = vmatpush3.msra.mxu0 %v970_v37  ;;  %2408 = vmatpush3.msra.mxu1 %v2195_v38 }
  0x50   : > { %2398 = vmatprep.subr.mxu0 %v2659_v2  ;;  %2409 = vmatprep.subr.mxu1 %v2659_v2 }
  0x51   : > { %2399 = vmatpush3.msra.mxu0 %v969_v39  ;;  %2410 = vmatpush3.msra.mxu1 %v2194_v40 }
  0x52   : > { %2400 = vmatprep.subr.mxu0 %v2659_v2  ;;  %2411 = vmatprep.subr.mxu1 %v2659_v2 }
  0x53   : > { %2401 = vmatpush3.msra.mxu0 %v968_v41  ;;  %2402 = vmatprep.mubr.msk.f32.mxu0 %vm2660_vm1, %v2659_v2 }
  0x54   : > { %2412 = vmatpush3.msra.mxu1 %v2193_v42  ;;  %2403 = vmatmul.mubr.msk.f32.vlgmr.msra.gmra.mxu0 %vm351_vm0, %v967_v43 }
  0x55   : > { %2413 = vmatprep.mubr.msk.f32.mxu1 %vm2660_vm1, %v2659_v2  ;;  %2416 = vmatprep.subr.mxu0 %v2659_v2 }
  0x56   : > { %2427 = vmatprep.subr.mxu1 %v2659_v2  ;;  %2414 = vmatmul.mubr.msk.f32.vlgmr.msra.gmra.mxu1 %vm351_vm0, %v967_v43 }
  0x57   : > { %2417 = vmatpush3.msra.mxu0 %v2201_v44  ;;  %2428 = vmatpush3.msra.mxu1 %v2206_v45 }
  0x58   : > { %2418 = vmatprep.subr.mxu0 %v2659_v2  ;;  %2429 = vmatprep.subr.mxu1 %v2659_v2 }
  0x59   : > { %2419 = vmatpush3.msra.mxu0 %v2200_v46  ;;  %2430 = vmatpush3.msra.mxu1 %v2205_v47 }
  0x5a   : > { %2420 = vmatprep.subr.mxu0 %v2659_v2  ;;  %2431 = vmatprep.subr.mxu1 %v2659_v2 }
  0x5b   : > { %2421 = vmatpush3.msra.mxu0 %v2199_v48  ;;  %2432 = vmatpush3.msra.mxu1 %v2204_v49 }
  0x5c   : > { %2422 = vmatprep.subr.mxu0 %v2659_v2  ;;  %2433 = vmatprep.subr.mxu1 %v2659_v2 }
  0x5d   : > { %2423 = vmatpush3.msra.mxu0 %v2198_v50  ;;  %2424 = vmatprep.mubr.msk.f32.mxu0 %vm2660_vm1, %v2659_v2 }
  0x5e   : > { %2434 = vmatpush3.msra.mxu1 %v2203_v51  ;;  %2435 = vmatprep.mubr.msk.f32.mxu1 %vm2660_vm1, %v2659_v2 }
  0x5f   : > { %2425 = vmatmul.mubr.msk.f32.vlgmr.msra.gmra.mxu0 %vm351_vm0, %v967_v43  ;;  %2436 = vmatmul.mubr.msk.f32.vlgmr.msra.gmra.mxu1 %vm351_vm0, %v967_v43 }
  0x60   : > { %2438 = vmatprep.subr.mxu1 %v2659_v2  ;;  %2448 = vmatprep.subr.mxu0 %v2659_v2 }
  0x61   : > { %2440 = vmatprep.mubr.msk.f32.mxu1 %vm2660_vm1, %v2659_v2  ;;  %2450 = vmatprep.mubr.msk.f32.mxu0 %vm2660_vm1, %v2659_v2 }
  0xec   : > { %v421_v52 = vpop.f32.mrf.mxu0 }
  0xed   : > { %426 = vst.msk [vmem:[#allocation3] sm:$0xff] %vm425_vm2, %v421_v52 }
  0xee   : > { %v2316_v53 = vpop.f32.mrf.mxu0  ;;  %v500_v54 = vpop.f32.mrf.mxu1 }
  0xef   : > { %504 = vst.msk [vmem:[#allocation4] sm:$0xff] %vm425_vm2, %v500_v54 }
  0xf0   : > { %v2327_v55 = vpop.f32.mrf.mxu1 }
  0xf4   : > { %v1287_v56 = vld [vmem:[#allocation3] sm:$0xff] }
  0xf5   : > { %2439 = vmatpush3.xpose.msk.msra.mxu1 %vm425_vm2, %v1287_v56 }
  0xf6   : > { %v576_v57 = vpop.f32.mrf.mxu0  ;;  %2443 = vmatprep.subr.mxu1 %v2659_v2  ;;  %v1291_v25 = vld [vmem:[#allocation4] sm:$0xff] }
  0xf7   : > { %581 = vst.msk [vmem:[#allocation3 + $0x8] sm:$0xff] %vm425_vm2, %v576_v57 }
  0xf8   : > { %v2338_v58 = vpop.f32.mrf.mxu0  ;;  %v653_v59 = vpop.f32.mrf.mxu1 }
  0xf9   : > { %658 = vst.msk [vmem:[#allocation4 + $0x8] sm:$0xff] %vm425_vm2, %v653_v59 }
  0xfa   : > { %v2349_v60 = vpop.f32.mrf.mxu1 }
  0xfe   : > { %v1288_v16 = vld [vmem:[#allocation3 + $0x8] sm:$0xff] }
 0x100   : > { %v730_v61 = vpop.f32.mrf.mxu0  ;;  %v1292_v26 = vld [vmem:[#allocation4 + $0x8] sm:$0xff] }
 0x101   : > { %735 = vst.msk [vmem:[#allocation3 + $0x10] sm:$0xff] %vm425_vm2, %v730_v61 }
 0x102   : > { %v2360_v62 = vpop.f32.mrf.mxu0  ;;  %v807_v63 = vpop.f32.mrf.mxu1 }
 0x103   : > { %812 = vst.msk [vmem:[#allocation4 + $0x10] sm:$0xff] %vm425_vm2, %v807_v63 }
 0x104   : > { %v2371_v0 = vpop.f32.mrf.mxu1 }
 0x108   : > { %v1289_v1 = vld [vmem:[#allocation3 + $0x10] sm:$0xff] }
 0x109   : > { %2449 = vmatpush3.xpose.msk.msra.mxu0 %vm425_vm2, %v1289_v1 }
 0x10a   : > { %v884_v3 = vpop.f32.mrf.mxu0  ;;  %2458 = vmatprep.subr.mxu0 %v2659_v2 }
 0x10b   : > { %889 = vst.msk [vmem:[#allocation3 + $0x18] sm:$0xff] %vm425_vm2, %v884_v3 }
 0x10c   : > { %v2382_v4 = vpop.f32.mrf.mxu0  ;;  %v961_v5 = vpop.f32.mrf.mxu1 }
 0x10d   : > { %966 = vst.msk [vmem:[#allocation4 + $0x18] sm:$0xff] %vm425_vm2, %v961_v5 }
 0x10e   : > { %v2393_v6 = vpop.f32.mrf.mxu1 }
 0x112   : > { %v1290_v22 = vld [vmem:[#allocation3 + $0x18] sm:$0xff] }
 0x114   : > { %v1042_v7 = vpop.f32.mrf.mxu0 }
 0x115   : > { %v1046_v8 = vmul.f32 0.35355338, %v1042_v7 }
 0x116   : > { %v2404_v9 = vpop.f32.mrf.mxu0  ;;  %v1120_v10 = vpop.f32.mrf.mxu1 }
 0x117   : > { %1048 = vst.msk [vmem:[#allocation2] sm:$0xff] %vm425_vm2, %v1046_v8  ;;  %v1124_v11 = vmul.f32 0.35355338, %v1120_v10  ;;  %v1293_v9 = vld [vmem:[#allocation4 + $0x10] sm:$0xff] }
 0x118   : > { %v2415_v12 = vpop.f32.mrf.mxu1 }
 0x119   : > { %1126 = vst.msk [vmem:[#allocation2 + $0x8] sm:$0xff] %vm425_vm2, %v1124_v11  ;;  %v1294_v12 = vld [vmem:[#allocation4 + $0x18] sm:$0xff] }
 0x11e   : > { %v1283_v13 = vld [vmem:[#allocation2] sm:$0xff] }
 0x11f   : > { %v1198_v14 = vpop.f32.mrf.mxu0  ;;  %v1276_v15 = vpop.f32.mrf.mxu1  ;;  %2441 = vmatmul.mubr.msk.f32.vlgmr.msra.gmra.mxu1 %vm425_vm2, %v1283_v13 }
 0x120   : > { %v1202_v17 = vmul.f32 0.35355338, %v1198_v14  ;;  %v1280_v18 = vmul.f32 0.35355338, %v1276_v15  ;;  %2444 = vmatpush3.xpose.msk.msra.mxu1 %vm425_vm2, %v1288_v16  ;;  %2445 = vmatprep.mubr.msk.f32.mxu1 %vm2660_vm1, %v2659_v2  ;;  %v1284_v19 = vld [vmem:[#allocation2 + $0x8] sm:$0xff] }
 0x121   : > { %v2426_v20 = vpop.f32.mrf.mxu0  ;;  %v2437_v21 = vpop.f32.mrf.mxu1  ;;  %2453 = vmatprep.subr.mxu1 %v2659_v2 }
 0x122   : > { %1204 = vst.msk [vmem:[#allocation2 + $0x10] sm:$0xff] %vm425_vm2, %v1202_v17  ;;  %1282 = vst.msk [vmem:[#allocation2 + $0x18] sm:$0xff] %vm425_vm2, %v1280_v18  ;;  %v1965_v20 = vld [vmem:[%s3160_s7 + $0x10] sm:$0xff] }
 0x123   : > { %2446 = vmatmul.mubr.msk.f32.vlgmr.msra.gmra.mxu1 %vm425_vm2, %v1284_v19  ;;  %v1966_v19 = vld [vmem:[%s3160_s7 + $0x18] sm:$0xff] }
 0x124   : > { %2454 = vmatpush3.xpose.msk.msra.mxu1 %vm425_vm2, %v1290_v22  ;;  %2455 = vmatprep.mubr.msk.f32.mxu1 %vm2660_vm1, %v2659_v2  ;;  %v1964_v22 = vld [vmem:[%s3160_s7 + $0x8] sm:$0xff] }
 0x125   : > { %2463 = vmatprep.subr.mxu1 %v2659_v2 }
 0x129   : > { %v1285_v23 = vld [vmem:[#allocation2 + $0x10] sm:$0xff]  ;;  %v1286_v24 = vld [vmem:[#allocation2 + $0x18] sm:$0xff] }
 0x12a   : > { %2451 = vmatmul.mubr.msk.f32.vlgmr.msra.gmra.mxu0 %vm425_vm2, %v1285_v23  ;;  %2456 = vmatmul.mubr.msk.f32.vlgmr.msra.gmra.mxu1 %vm425_vm2, %v1286_v24  ;;  %v1963_v24 = vld [vmem:[%s3160_s7] sm:$0xff] }
 0x12b   : > { %2459 = vmatpush3.msra.mxu0 %v1291_v25  ;;  %2464 = vmatpush3.msra.mxu1 %v1292_v26 }
 0x12c   : > { %2460 = vmatprep.mubr.msk.f32.mxu0 %vm2660_vm1, %v2659_v2  ;;  %2468 = vmatprep.subr.mxu0 %v2659_v2 }
 0x12d   : > { %2465 = vmatprep.mubr.msk.f32.mxu1 %vm2660_vm1, %v2659_v2  ;;  %2473 = vmatprep.subr.mxu1 %v2659_v2 }
 0x1df   : > { %v1367_v30 = vpop.f32.mrf.mxu1 }
 0x1e0   : > { %v1603_v31 = vsel %vm1602_vm3, %v1367_v30, -1000000.0 }
 0x1e1   : > { %v2442_v32 = vpop.f32.mrf.mxu1  ;;  %v1607_v33 = vsel %vm425_vm2, %v1603_v31, -inf }
 0x1e2   : > { %1608 = vmax.xlane.f32.xlu0 %v1607_v33 }
 0x1e3   : > { %v1443_v34 = vpop.f32.mrf.mxu1 }
 0x1e4   : > { %v1604_v35 = vsel %vm1602_vm3, %v1443_v34, -1000000.0 }
 0x1e5   : > { %v2447_v36 = vpop.f32.mrf.mxu1  ;;  %v1610_v37 = vsel %vm425_vm2, %v1604_v35, -inf }
 0x1e6   : > { %1611 = vmax.xlane.f32.xlu0 %v1610_v37 }
 0x1ea   : > { %v1519_v38 = vpop.f32.mrf.mxu0  ;;  %v1595_v39 = vpop.f32.mrf.mxu1 }
 0x1eb   : > { %v1605_v40 = vsel %vm1602_vm3, %v1519_v38, -1000000.0  ;;  %v1606_v41 = vsel %vm1602_vm3, %v1595_v39, -1000000.0 }
 0x1ec   : > { %v2452_v42 = vpop.f32.mrf.mxu0  ;;  %v1613_v43 = vsel %vm425_vm2, %v1605_v40, -inf  ;;  %v2457_v44 = vpop.f32.mrf.mxu1  ;;  %v1616_v45 = vsel %vm425_vm2, %v1606_v41, -inf }
 0x1ed   : > { %1614 = vmax.xlane.f32.xlu1 %v1613_v43 }
 0x1f1   : > { %1617 = vmax.xlane.f32.xlu1 %v1616_v45 }
 0x26b   : > { %v1609_v46 = vpop.xlane.xlu0 %1608 }
 0x26c   : > { %v1619_v47 = vsub.f32 %v1603_v31, %v1609_v46 }
 0x26e   : > { %v1623_v48 = vmul.f32 1.442695, %v1619_v47 }
 0x26f   : > { %v1612_v49 = vpop.xlane.xlu0 %1611 }
 0x270   : > { %2550 = vpow2.f32 %v1623_v48  ;;  %v1620_v50 = vsub.f32 %v1604_v35, %v1612_v49 }
 0x272   : > { %v1625_v51 = vmul.f32 1.442695, %v1620_v50 }
 0x274   : > { %2552 = vpow2.f32 %v1625_v51 }
 0x276   : > { %v1615_v52 = vpop.xlane.xlu1 %1614 }
 0x277   : > { %v1621_v53 = vsub.f32 %v1605_v40, %v1615_v52 }
 0x279   : > { %v1627_v54 = vmul.f32 1.442695, %v1621_v53 }
 0x27a   : > { %v1618_v55 = vpop.xlane.xlu1 %1617 }
 0x27b   : > { %2554 = vpow2.f32 %v1627_v54  ;;  %v1622_v56 = vsub.f32 %v1606_v41, %v1618_v55 }
 0x27d   : > { %v2551_v57 = vpop.eup %2550  ;;  %v1629_v58 = vmul.f32 1.442695, %v1622_v56 }
 0x27e   : > { %v1631_v59 = vsel %vm425_vm2, %v2551_v57, 0.0 }
 0x27f   : > { %2556 = vpow2.f32 %v1629_v58  ;;  %1632 = vadd.xlane.f32.xlu0 %v1631_v59 }
 0x281   : > { %v2553_v60 = vpop.eup %2552 }
 0x282   : > { %v1634_v61 = vsel %vm425_vm2, %v2553_v60, 0.0 }
 0x283   : > { %1635 = vadd.xlane.f32.xlu1 %v1634_v61 }
 0x288   : > { %v2555_v62 = vpop.eup %2554 }
 0x289   : > { %v1637_v63 = vsel %vm425_vm2, %v2555_v62, 0.0 }
 0x28a   : > { %1638 = vadd.xlane.f32.xlu0 %v1637_v63 }
 0x28c   : > { %v2557_v0 = vpop.eup %2556 }
 0x28d   : > { %v1640_v1 = vsel %vm425_vm2, %v2557_v0, 0.0 }
 0x28e   : > { %1641 = vadd.xlane.f32.xlu1 %v1640_v1 }
 0x308   : > { %v1633_v3 = vpop.xlane.xlu0 %1632 }
 0x309   : > { %2558 = vrcp.f32 %v1633_v3 }
 0x30c   : > { %v1636_v4 = vpop.xlane.xlu1 %1635 }
 0x30d   : > { %2560 = vrcp.f32 %v1636_v4 }
 0x313   : > { %v1639_v5 = vpop.xlane.xlu0 %1638 }
 0x314   : > { %2562 = vrcp.f32 %v1639_v5 }
 0x316   : > { %v2559_v6 = vpop.eup %2558 }
 0x317   : > { %v1642_v7 = vpop.xlane.xlu1 %1641  ;;  %v1647_v8 = vmul.f32 %v2559_v6, %v2551_v57 }
 0x318   : > { %2564 = vrcp.f32 %v1642_v7 }
 0x319   : > { %2461 = vmatmul.mubr.msk.f32.vlgmr.msra.gmra.mxu0 %vm425_vm2, %v1647_v8 }
 0x31a   : > { %v2561_v10 = vpop.eup %2560  ;;  %2469 = vmatpush3.msra.mxu0 %v1293_v9  ;;  %2470 = vmatprep.mubr.msk.f32.mxu0 %vm2660_vm1, %v2659_v2 }
 0x31b   : > { %v1648_v11 = vmul.f32 %v2561_v10, %v2553_v60  ;;  %2478 = vmatprep.subr.mxu0 %v2659_v2 }
 0x31d   : > { %2466 = vmatmul.mubr.msk.f32.vlgmr.msra.gmra.mxu1 %vm425_vm2, %v1648_v11 }
 0x31e   : > { %2474 = vmatpush3.msra.mxu1 %v1294_v12  ;;  %2475 = vmatprep.mubr.msk.f32.mxu1 %vm2660_vm1, %v2659_v2 }
 0x321   : > { %v2563_v13 = vpop.eup %2562 }
 0x322   : > { %v1649_v14 = vmul.f32 %v2563_v13, %v2555_v62 }
 0x324   : > { %2471 = vmatmul.mubr.msk.f32.vlgmr.msra.gmra.mxu0 %vm425_vm2, %v1649_v14 }
 0x325   : > { %v2565_v15 = vpop.eup %2564  ;;  %2486 = vmatprep.mubr.msk.f32.mxu0 %vm2660_vm1, %v2659_v2  ;;  %2479 = vmatpush3.msra.mxu0 %v1966_v19 }
 0x326   : > { %v1650_v16 = vmul.f32 %v2565_v15, %v2557_v0  ;;  %2480 = vmatprep.subr.mxu0 %v2659_v2 }
 0x327   : > { %2481 = vmatpush3.msra.mxu0 %v1965_v20 }
 0x328   : > { %2476 = vmatmul.mubr.msk.f32.vlgmr.msra.gmra.mxu1 %vm425_vm2, %v1650_v16  ;;  %2482 = vmatprep.subr.mxu0 %v2659_v2 }
 0x329   : > { %2483 = vmatpush3.msra.mxu0 %v1964_v22 }
 0x32a   : > { %2484 = vmatprep.subr.mxu0 %v2659_v2 }
 0x32b   : > { %2485 = vmatpush3.msra.mxu0 %v1963_v24 }
 0x3d9   : > { %v1720_v17 = vpop.f32.mrf.mxu0 }
 0x3da   : > { %1943 = vst.msk [vmem:[#allocation5] sm:$0xff] %vm425_vm2, %v1720_v17 }
 0x3db   : > { %v2462_v18 = vpop.f32.mrf.mxu0 }
 0x3dd   : > { %v1793_v21 = vpop.f32.mrf.mxu1 }
 0x3de   : > { %1945 = vrot.lane.b32.xlu0 %v1793_v21, %s2661_s24 }
 0x3df   : > { %v2467_v23 = vpop.f32.mrf.mxu1 }
 0x3e4   : > { %v1866_v25 = vpop.f32.mrf.mxu0 }
 0x3e5   : > { %1951 = vrot.lane.b32.xlu1 %v1866_v25, %s2662_s23  ;;  %s2584_s23 = scalar_lea.vmem %s2583_s28, 256 }
 0x3e6   : > { %v2472_v26 = vpop.f32.mrf.mxu0  ;;  %p2586_p7 = scmp.lt.s32.totalorder %s2584_s23, %s2578_s27 }
 0x3e8   : > { %v1939_v27 = vpop.f32.mrf.mxu1  ;;  %p2587_p8 = por %p2586_p7, %p2585_p6 }
 0x3e9   : > { %1957 = vrot.lane.b32.xlu1 %v1939_v27, %s2663_s29 }
 0x3ea   : > { %v2477_v28 = vpop.f32.mrf.mxu1  ;;  %p2588_p10 = pnand %p2587_p8, %p2581_p5 }
 0x450   : > { %v1946_v29 = vpop.permute.xlu0 %1945 }
 0x451   : > { %1949 = vst.msk [vmem:[#allocation5] sm:$0xff] %vm1948_vm4, %v1946_v29 }
 0x457   : > { %v1952_v30 = vpop.permute.xlu1 %1951 }
 0x458   : > { %1955 = vst.msk [vmem:[#allocation5] sm:$0xff] %vm1954_vm5, %v1952_v30 }
 0x45b   : > { %v1958_v31 = vpop.permute.xlu1 %1957 }
 0x45c   : > { %1961 = vst.msk [vmem:[#allocation5] sm:$0xff] %vm1960_vm6, %v1958_v31 }
 0x463   : > { %v1962_v2 = vld [vmem:[#allocation5] sm:$0xff] }
 0x464   : > { %2487 = vmatmul.mubr.msk.f32.vlgmr.msra.gmra.mxu0 %vm351_vm0, %v1962_v2 }
 0x524   : > { %v2036_v32 = vpop.f32.mrf.mxu0 }
 0x525   : > { %2040 = vst.msk [vmem:[%s324_s16] sm:$0xff] %vm351_vm0, %v2036_v32 }
 0x526   : > { %v2488_v33 = vpop.f32.mrf.mxu0 }
 0x527   : > { %2591 = shalt.err (!%p2588_p10)
}
 0x528   : > { %s2592_s29 = scalar_lea.hbm %s3106_s25, 128  ;;  %s2596_s9 = scalar_lea.hbm %s3161_s8, 256 }
 0x529   : > { %p2593_p11 = scmp.ne.s32.totalorder %s3106_s25, %s2592_s29  ;;  %p2597_p1 = scmp.lt.s32.totalorder %s3106_s25, %s3161_s8 }
 0x52a   : > { %p2598_p2 = scmp.lt.s32.totalorder %s2596_s9, %s2592_s29 }
 0x52b   : > { %p2594_p12 = pnand %p2593_p11, %p2753_p9 }
 0x52c   : > { %p2599_p3 = por %p2598_p2, %p2597_p1 }
 0x52d   : > { %p2595_p0 = pneg %p2594_p12 }
 0x52f   : > { %p2600_p4 = pnand %p2599_p3, %p2595_p0 }
 0x531   : > { %2603 = shalt.err (!%p2600_p4)
}
 0x532   : > { %2489 = dma.vmem_to_hbm [thread:$0]  (%p2753_p9), %s3108_s18, 128, %s3106_s25, %s2042_s26  }
 0x533 PF: > { %p2495_p5 = scmp.ge.s32.totalorder %s2656_s14, 2  ;;  %s2068_s24 = sand.u32 1, %s2636_s10  }
 0x534   : > { %s2069_s27 = scalar_lea.sflag [#allocation9], %s2068_s24 }
 0x535   : > { %p2492_p6 = pnand %p2495_p5, %p2760_p13 }
 0x537   : > { %p2493_p7 = pneg %p2492_p6 }
 0x539   : > { %2631 = dma.done.wait (%p2493_p7), %s2069_s27, 128  }
 0x53a   : > { %2633 = vsyncadd (%p2493_p7), %s2069_s27, 4294967168  ;;  %s27_s14 = sadd.s32 1, %s2656_s14   ;;  %s3164_s10 = smov %s2640_s11 }
 0x53b   : > { %p24_p8 = scmp.ge.s32.totalorder %s27_s14, 4   ;;  %s3165_s11 = smov %s2644_s0 }
 0x53c   : > { %s3166_s0 = smov %s2766_s22  ;;  %s3167_s12 = smov %s2652_s13 }
 0x53d   : > { %s3168_s13 = smov %s3170_s17  ;;  %26 = sbr.rel (!%p24_p8) target bundleno = 19 (0x13), region = 111 }
 0x542   :  { %2074 = vsyncpa [#allocation9], 1 }
 0x543   :  { %2076 = vsyncpa [#allocation9 + $0x1], 1 }

</bundles_post_ra>
